<compile_context>
chip_gen: v6e
topology: v6e:2x2x1
jax: 0.10.0
libtpu: 0.0.40
codegen_flags: <defaults>
</compile_context>

<pallas_src>
import functools

import jax
import jax.numpy as jnp
from jax.experimental import pallas as pl
from jax.experimental.pallas import tpu as pltpu


def _vae_kernel(x_ref, eps_z_ref, eps_x_ref,
                w1_ref, b1_ref, wenc_ref, benc_ref,
                w2_ref, b2_ref, wdec_ref, bdec_ref,
                enc_ref, xrec_ref, mu_t_ref, ls_t_ref,
                mu_sc, std_sc, z_sc,
                *, latent_dim, out_dim, lb, tb):
    M, D, LB, TB = latent_dim, out_dim, lb, tb
    f32, bf16 = jnp.float32, jnp.bfloat16

    # ---------------- Encoder: once per batch tile (first L-step) ----------------
    @pl.when(pl.program_id(1) == 0)
    def _encode():
        x = x_ref[...].astype(bf16)                                       # (TB, D)
        h = jnp.maximum(
            jnp.dot(x, w1_ref[...], preferred_element_type=f32) + b1_ref[...],
            0.0)                                                          # (TB, H) f32
        enc = (jnp.dot(h.astype(bf16), wenc_ref[...], preferred_element_type=f32)
               + benc_ref[...])                                           # (TB, 2M)
        enc_ref[...] = enc                    # lane-dense [mu_phi | log_sigma2_phi]
        mu_sc[...] = enc[:, :M]
        std_sc[...] = jnp.exp(0.5 * enc[:, M:])

    mu_phi = mu_sc[...]                                                   # (TB, M)
    std = std_sc[...]                                                     # (TB, M)

    # -------- Reparameterize: stack LB samples along sublanes (VPU only) --------
    # LB is small & static -> unrolled.  For large LB use lax.fori_loop with
    # pl.ds(l*TB, TB) starts to keep vreg pressure flat.
    for l in range(LB):
        z_sc[pl.ds(l * TB, TB), :] = mu_phi + eps_z_ref[l] * std

    # -------- Decoder: ONE batched matmul per layer across all LB samples -------
    h2 = jnp.maximum(
        jnp.dot(z_sc[...].astype(bf16), w2_ref[...], preferred_element_type=f32)
        + b2_ref[...], 0.0)                                               # (LB*TB, H)
    dec = (jnp.dot(h2.astype(bf16), wdec_ref[...], preferred_element_type=f32)
           + bdec_ref[...])                                               # (LB*TB, 2D)
    mu_t = jax.nn.sigmoid(dec[:, :D])
    ls_t = dec[:, D:]
    # TODO(synk): at production sizes pad M/D (fused heads) to multiples of 128
    # so head slices and per-sample stores are lane-aligned (no masked vst).

    for l in range(LB):
        mu_l = mu_t[l * TB:(l + 1) * TB, :]                               # (TB, D)
        ls_l = ls_t[l * TB:(l + 1) * TB, :]
        mu_t_ref[l] = mu_l
        ls_t_ref[l] = ls_l
        xrec_ref[l] = mu_l + eps_x_ref[l] * jnp.exp(0.5 * ls_l)


def _round_up(n, m):
    return (n + m - 1) // m * m


def _pick_batch_tile(b_pad, max_tile=256):
    """Multiple-of-8 tile dividing b_pad; prefer >=2 batch programs when possible."""
    cap = min(max_tile, b_pad)
    if b_pad >= 16:
        cap = min(cap, b_pad // 2)      # leave >=2 parallel programs (v7x TC sharding)
    cap = max(8, (cap // 8) * 8)
    for t in range(cap, 7, -8):
        if b_pad % t == 0:
            return t
    return 8                            # b_pad is a multiple of 8, always valid


def _tile_vmem_bytes(tb, lb, d, m, weight_bytes):
    in_tiles = tb * d * 4 + lb * tb * m * 4 + lb * tb * d * 4
    out_tiles = tb * 2 * m * 4 + 3 * lb * tb * d * 4
    scratch = (lb * tb * m + 2 * tb * m) * 4
    return 2 * (in_tiles + out_tiles) + scratch + weight_bytes   # 2x: double buffering


def _pick_sample_block(L, tb, d, m, weight_bytes, budget_bytes, max_lb=None):
    cap = L if max_lb is None else max(1, min(L, max_lb))
    best = 1
    for lb in range(1, cap + 1):
        if L % lb == 0 and _tile_vmem_bytes(tb, lb, d, m, weight_bytes) <= budget_bytes:
            best = lb
    return best


def vae_forward(params, x, eps_z, eps_x, L, *, max_samples_per_block=None,
                vmem_budget_bytes=24 << 20):
    """Returns (x_reconstructed, mu_phi, log_sigma2_phi, mu_theta, log_sigma2_theta).

    x: (B, D); eps_z: (B, L, M); eps_x: (B, L, D).  Row ordering of the (B*L, D)
    outputs matches torch's .view(-1, D) (b-major).
    """
    B, D = x.shape
    M = params["wenc"].shape[1] // 2
    assert eps_z.shape == (B, L, M), eps_z.shape
    assert eps_x.shape == (B, L, D), eps_x.shape

    bf16 = jnp.bfloat16
    w1, b1 = params["w1"].astype(bf16), params["b1"]
    wenc, benc = params["wenc"].astype(bf16), params["benc"]
    w2, b2 = params["w2"].astype(bf16), params["b2"]
    wdec, bdec = params["wdec"].astype(bf16), params["bdec"]
    weights = (w1, b1, wenc, benc, w2, b2, wdec, bdec)
    weight_bytes = sum(int(a.size) * a.dtype.itemsize for a in weights)

    B_pad = _round_up(B, 8)
    TB = _pick_batch_tile(B_pad)
    LB = _pick_sample_block(L, TB, D, M, weight_bytes, vmem_budget_bytes,
                            max_lb=max_samples_per_block)
    grid = (B_pad // TB, L // LB)

    # Ragged batch handled by zero-padding (sliced off below), never by one giant tile.
    if B_pad != B:
        x = jnp.pad(x, ((0, B_pad - B), (0, 0)))
        eps_z = jnp.pad(eps_z, ((0, B_pad - B), (0, 0), (0, 0)))
        eps_x = jnp.pad(eps_x, ((0, B_pad - B), (0, 0), (0, 0)))

    # L-major layout: each grid block is (LB, TB, full-dim) -> (8,128)-rule safe.
    eps_z_t = jnp.transpose(eps_z, (1, 0, 2))        # (L, B_pad, M)
    eps_x_t = jnp.transpose(eps_x, (1, 0, 2))        # (L, B_pad, D)

    def full_spec(a):
        nd = a.ndim
        # NOTE: resident weights; at production sizes add pipeline_mode=pl.Buffered(1)
        # to drop the unused second buffer.
        return pl.BlockSpec(a.shape, lambda i, l, _nd=nd: (0,) * _nd)

    in_specs = [
        pl.BlockSpec((TB, D), lambda i, l: (i, 0)),            # x (constant over L axis)
        pl.BlockSpec((LB, TB, M), lambda i, l: (l, i, 0)),     # eps_z block
        pl.BlockSpec((LB, TB, D), lambda i, l: (l, i, 0)),     # eps_x block
    ] + [full_spec(a) for a in weights]

    out_shapes = (
        jax.ShapeDtypeStruct((B_pad, 2 * M), jnp.float32),     # [mu_phi | log_sigma2_phi]
        jax.ShapeDtypeStruct((L, B_pad, D), jnp.float32),      # x_reconstructed
        jax.ShapeDtypeStruct((L, B_pad, D), jnp.float32),      # mu_theta
        jax.ShapeDtypeStruct((L, B_pad, D), jnp.float32),      # log_sigma2_theta
    )
    out_specs = (
        pl.BlockSpec((TB, 2 * M), lambda i, l: (i, 0)),        # resident across L axis
        pl.BlockSpec((LB, TB, D), lambda i, l: (l, i, 0)),
        pl.BlockSpec((LB, TB, D), lambda i, l: (l, i, 0)),
        pl.BlockSpec((LB, TB, D), lambda i, l: (l, i, 0)),
    )
    scratch_shapes = [
        pltpu.VMEM((TB, M), jnp.float32),        # mu_phi, persists across the L axis
        pltpu.VMEM((TB, M), jnp.float32),        # std
        pltpu.VMEM((LB * TB, M), jnp.float32),   # batched z slab
    ]

    vmem_limit = int(min(max(2 * _tile_vmem_bytes(TB, LB, D, M, weight_bytes),
                             16 << 20), 96 << 20))

    kernel = functools.partial(_vae_kernel, latent_dim=M, out_dim=D, lb=LB, tb=TB)
    enc, xrec, mu_t, ls_t = pl.pallas_call(
        kernel,
        grid=grid,
        in_specs=in_specs,
        out_specs=out_specs,
        out_shape=out_shapes,
        scratch_shapes=scratch_shapes,
        compiler_params=pltpu.CompilerParams(
            dimension_semantics=("parallel", "arbitrary"),
            vmem_limit_bytes=vmem_limit,
        ),
    )(x, eps_z_t, eps_x_t, *weights)

    mu_phi = enc[:B, :M]
    ls_phi = enc[:B, M:]

    def to_bl(a):   # (L, B_pad, D) -> torch b-major (B*L, D)
        return jnp.transpose(a[:, :B, :], (1, 0, 2)).reshape(B * L, D)

    return to_bl(xrec), mu_phi, ls_phi, to_bl(mu_t), to_bl(ls_t)


def init_params(key, input_dim, hidden_dim, latent_dim):
    """torch.nn.Linear-style init; weights stored as (in, out); heads fused."""
    def linear(k, fan_in, fan_out):
        k1, k2 = jax.random.split(k)
        bound = 1.0 / jnp.sqrt(fan_in)
        w = jax.random.uniform(k1, (fan_in, fan_out), jnp.float32, -bound, bound)
        b = jax.random.uniform(k2, (1, fan_out), jnp.float32, -bound, bound)
        return w, b

    keys = jax.random.split(key, 6)
    w1, b1 = linear(keys[0], input_dim, hidden_dim)        # encoder.f
    wmu, bmu = linear(keys[1], hidden_dim, latent_dim)     # encoder.mu_phi
    wls, bls = linear(keys[2], hidden_dim, latent_dim)     # encoder.log_sigma2_phi
    w2, b2 = linear(keys[3], latent_dim, hidden_dim)       # decoder.f
    wmt, bmt = linear(keys[4], hidden_dim, input_dim)      # decoder.mu_theta
    wlst, blst = linear(keys[5], hidden_dim, input_dim)    # decoder.log_sigma2_theta
    return {
        "w1": w1, "b1": b1,
        "wenc": jnp.concatenate([wmu, wls], axis=1),
        "benc": jnp.concatenate([bmu, bls], axis=1),
        "w2": w2, "b2": b2,
        "wdec": jnp.concatenate([wmt, wlst], axis=1),
        "bdec": jnp.concatenate([bmt, blst], axis=1),
    }


def vae_reference(params, x, eps_z, eps_x, L):
    """Pure-JAX reference mirroring the PyTorch forward (training mode) with the
    same bf16-operand / f32-accumulate matmul precision as the kernel."""
    bf16, f32 = jnp.bfloat16, jnp.float32
    w1, b1 = params["w1"].astype(bf16), params["b1"]
    wenc, benc = params["wenc"].astype(bf16), params["benc"]
    w2, b2 = params["w2"].astype(bf16), params["b2"]
    wdec, bdec = params["wdec"].astype(bf16), params["bdec"]
    B, D = x.shape
    M = wenc.shape[1] // 2
    h = jnp.maximum(jnp.dot(x.astype(bf16), w1, preferred_element_type=f32) + b1, 0.0)
    enc = jnp.dot(h.astype(bf16), wenc, preferred_element_type=f32) + benc
    mu_phi, ls_phi = enc[:, :M], enc[:, M:]
    std = jnp.exp(0.5 * ls_phi)
    z = (mu_phi[:, None, :] + eps_z * std[:, None, :]).reshape(B * L, M)
    h2 = jnp.maximum(jnp.dot(z.astype(bf16), w2, preferred_element_type=f32) + b2, 0.0)
    dec = jnp.dot(h2.astype(bf16), wdec, preferred_element_type=f32) + bdec
    mu_t = jax.nn.sigmoid(dec[:, :D])
    ls_t = dec[:, D:]
    x_rec = mu_t + eps_x.reshape(B * L, D) * jnp.exp(0.5 * ls_t)
    return x_rec, mu_phi, ls_phi, mu_t, ls_t


if __name__ == "__main__":
    input_dim, hidden_dim, latent_dim, L = 16, 32, 8, 4
    B = 8

    root = jax.random.PRNGKey(0)
    k_param, k_x, k_ez, k_ex = jax.random.split(root, 4)

    params = init_params(k_param, input_dim, hidden_dim, latent_dim)
    x = jax.random.normal(k_x, (B, input_dim), jnp.float32)
    # eps for reparameterize (torch.randn_like(std), std is (B, L, M)) and for
    # the reconstruction sample (torch.randn_like(mu_theta), b-major (B, L, D)).
    eps_z = jax.random.normal(k_ez, (B, L, latent_dim), jnp.float32)
    eps_x = jax.random.normal(k_ex, (B, L, input_dim), jnp.float32)

    # max_samples_per_block=2 forces grid=(1, 2): exercises the blocked-L
    # "arbitrary" axis and the pl.when-gated encoder + persistent scratch.
    outs = jax.block_until_ready(
        vae_forward(params, x, eps_z, eps_x, L, max_samples_per_block=2))
    refs = vae_reference(params, x, eps_z, eps_x, L)
    for o, r in zip(outs, refs):
        assert o.shape == r.shape, (o.shape, r.shape)
        err = float(jnp.max(jnp.abs(o - r)))
        assert jnp.allclose(o, r, atol=1e-3, rtol=1e-3), err

    print("KERNEL_OK")
</pallas_src>

<mosaic_0001>
module attributes {stable_mosaic.version = 11 : i64} {
  func.func @_vae_kernel(%arg0: i32, %arg1: i32, %arg2: memref<8x16xf32, #tpu.memory_space<vmem>>, %arg3: memref<2x8x8xf32, #tpu.memory_space<vmem>>, %arg4: memref<2x8x16xf32, #tpu.memory_space<vmem>>, %arg5: memref<16x32xbf16, #tpu.memory_space<vmem>>, %arg6: memref<1x32xf32, #tpu.memory_space<vmem>>, %arg7: memref<32x16xbf16, #tpu.memory_space<vmem>>, %arg8: memref<1x16xf32, #tpu.memory_space<vmem>>, %arg9: memref<8x32xbf16, #tpu.memory_space<vmem>>, %arg10: memref<1x32xf32, #tpu.memory_space<vmem>>, %arg11: memref<32x32xbf16, #tpu.memory_space<vmem>>, %arg12: memref<1x32xf32, #tpu.memory_space<vmem>>, %arg13: memref<8x16xf32, #tpu.memory_space<vmem>>, %arg14: memref<2x8x16xf32, #tpu.memory_space<vmem>>, %arg15: memref<2x8x16xf32, #tpu.memory_space<vmem>>, %arg16: memref<2x8x16xf32, #tpu.memory_space<vmem>>, %arg17: memref<8x8xf32, #tpu.memory_space<vmem>>, %arg18: memref<8x8xf32, #tpu.memory_space<vmem>>, %arg19: memref<16x8xf32, #tpu.memory_space<vmem>>) attributes {dimension_semantics = [#tpu.dimension_semantics<parallel>, #tpu.dimension_semantics<arbitrary>], iteration_bounds = array<i64: 1, 2>, scalar_prefetch = 0 : i64, scratch_operands = 3 : i64, tpu.core_type = #tpu.core_type<tc>, window_params = [{transform_indices = @transform_0, window_bounds = array<i64: 8, 16>}, {transform_indices = @transform_1, window_bounds = array<i64: 2, 8, 8>}, {transform_indices = @transform_2, window_bounds = array<i64: 2, 8, 16>}, {pipeline_mode = #tpu.pipeline_mode<synchronous>, transform_indices = @transform_3, window_bounds = array<i64: 16, 32>}, {pipeline_mode = #tpu.pipeline_mode<synchronous>, transform_indices = @transform_4, window_bounds = array<i64: 1, 32>}, {pipeline_mode = #tpu.pipeline_mode<synchronous>, transform_indices = @transform_5, window_bounds = array<i64: 32, 16>}, {pipeline_mode = #tpu.pipeline_mode<synchronous>, transform_indices = @transform_6, window_bounds = array<i64: 1, 16>}, {pipeline_mode = #tpu.pipeline_mode<synchronous>, transform_indices = @transform_7, window_bounds = array<i64: 8, 32>}, {pipeline_mode = #tpu.pipeline_mode<synchronous>, transform_indices = @transform_8, window_bounds = array<i64: 1, 32>}, {pipeline_mode = #tpu.pipeline_mode<synchronous>, transform_indices = @transform_9, window_bounds = array<i64: 32, 32>}, {pipeline_mode = #tpu.pipeline_mode<synchronous>, transform_indices = @transform_10, window_bounds = array<i64: 1, 32>}, {transform_indices = @transform_11, window_bounds = array<i64: 8, 16>}, {transform_indices = @transform_12, window_bounds = array<i64: 2, 8, 16>}, {transform_indices = @transform_13, window_bounds = array<i64: 2, 8, 16>}, {transform_indices = @transform_14, window_bounds = array<i64: 2, 8, 16>}]} {
    %c0_i32 = arith.constant 0 : i32
    %0 = arith.cmpi eq, %arg1, %c0_i32 : i32
    %1 = arith.extui %0 : i1 to i32
    %c0_i32_0 = arith.constant 0 : i32
    %2 = arith.cmpi ne, %1, %c0_i32_0 : i32
    scf.if %2 {
      %c0_51 = arith.constant 0 : index
      %c0_52 = arith.constant 0 : index
      %73 = vector.load %arg2[%c0_51, %c0_52] : memref<8x16xf32, #tpu.memory_space<vmem>>, vector<8x16xf32>
      %74 = arith.truncf %73 : vector<8x16xf32> to vector<8x16xbf16>
      %c0_53 = arith.constant 0 : index
      %c0_54 = arith.constant 0 : index
      %75 = vector.load %arg5[%c0_53, %c0_54] : memref<16x32xbf16, #tpu.memory_space<vmem>>, vector<16x32xbf16>
      %cst_55 = arith.constant dense<0.000000e+00> : vector<8x32xf32>
      %76 = tpu.matmul %74, %75, %cst_55 {dimension_numbers = #tpu.dot_dimension_numbers<[1], [0], [0], [1], [0, 0, 1, 1], [], []>} : vector<8x16xbf16>, vector<16x32xbf16>, vector<8x32xf32> -> vector<8x32xf32>
      %c0_56 = arith.constant 0 : index
      %c0_57 = arith.constant 0 : index
      %77 = vector.load %arg6[%c0_56, %c0_57] : memref<1x32xf32, #tpu.memory_space<vmem>>, vector<1x32xf32>
      %78 = vector.broadcast %77 : vector<1x32xf32> to vector<8x32xf32>
      %79 = arith.addf %76, %78 : vector<8x32xf32>
      %cst_58 = arith.constant 0.000000e+00 : f32
      %80 = vector.broadcast %cst_58 : f32 to vector<8x32xf32>
      %81 = arith.maximumf %79, %80 : vector<8x32xf32>
      %82 = arith.truncf %81 : vector<8x32xf32> to vector<8x32xbf16>
      %c0_59 = arith.constant 0 : index
      %c0_60 = arith.constant 0 : index
      %83 = vector.load %arg7[%c0_59, %c0_60] : memref<32x16xbf16, #tpu.memory_space<vmem>>, vector<32x16xbf16>
      %cst_61 = arith.constant dense<0.000000e+00> : vector<8x16xf32>
      %84 = tpu.matmul %82, %83, %cst_61 {dimension_numbers = #tpu.dot_dimension_numbers<[1], [0], [0], [1], [0, 0, 1, 1], [], []>} : vector<8x32xbf16>, vector<32x16xbf16>, vector<8x16xf32> -> vector<8x16xf32>
      %c0_62 = arith.constant 0 : index
      %c0_63 = arith.constant 0 : index
      %85 = vector.load %arg8[%c0_62, %c0_63] : memref<1x16xf32, #tpu.memory_space<vmem>>, vector<1x16xf32>
      %86 = vector.broadcast %85 : vector<1x16xf32> to vector<8x16xf32>
      %87 = arith.addf %84, %86 : vector<8x16xf32>
      %c0_64 = arith.constant 0 : index
      %c0_65 = arith.constant 0 : index
      %88 = vector.load %arg13[%c0_64, %c0_65] : memref<8x16xf32, #tpu.memory_space<vmem>>, vector<8x16xf32>
      tpu.vector_store %arg13[%c0_64, %c0_65], %87 {strides = array<i32>} : memref<8x16xf32, #tpu.memory_space<vmem>>, vector<8x16xf32>,
      %89 = vector.extract_strided_slice %87 {offsets = [0, 0], sizes = [8, 8], strides = [1, 1]} : vector<8x16xf32> to vector<8x8xf32>
      %c0_66 = arith.constant 0 : index
      %c0_67 = arith.constant 0 : index
      %90 = vector.load %arg17[%c0_66, %c0_67] : memref<8x8xf32, #tpu.memory_space<vmem>>, vector<8x8xf32>
      tpu.vector_store %arg17[%c0_66, %c0_67], %89 {strides = array<i32>} : memref<8x8xf32, #tpu.memory_space<vmem>>, vector<8x8xf32>,
      %91 = vector.extract_strided_slice %87 {offsets = [0, 8], sizes = [8, 8], strides = [1, 1]} : vector<8x16xf32> to vector<8x8xf32>
      %cst_68 = arith.constant 5.000000e-01 : f32
      %92 = vector.broadcast %cst_68 : f32 to vector<8x8xf32>
      %93 = arith.mulf %92, %91 : vector<8x8xf32>
      %94 = math.exp %93 : vector<8x8xf32>
      %c0_69 = arith.constant 0 : index
      %c0_70 = arith.constant 0 : index
      %95 = vector.load %arg18[%c0_69, %c0_70] : memref<8x8xf32, #tpu.memory_space<vmem>>, vector<8x8xf32>
      tpu.vector_store %arg18[%c0_69, %c0_70], %94 {strides = array<i32>} : memref<8x8xf32, #tpu.memory_space<vmem>>, vector<8x8xf32>,
    } else {
    }
    %c0 = arith.constant 0 : index
    %c0_1 = arith.constant 0 : index
    %3 = vector.load %arg17[%c0, %c0_1] : memref<8x8xf32, #tpu.memory_space<vmem>>, vector<8x8xf32>
    %c0_2 = arith.constant 0 : index
    %c0_3 = arith.constant 0 : index
    %4 = vector.load %arg18[%c0_2, %c0_3] : memref<8x8xf32, #tpu.memory_space<vmem>>, vector<8x8xf32>
    %c0_4 = arith.constant 0 : index
    %c0_5 = arith.constant 0 : index
    %c0_6 = arith.constant 0 : index
    %5 = vector.load %arg3[%c0_4, %c0_5, %c0_6] : memref<2x8x8xf32, #tpu.memory_space<vmem>>, vector<1x8x8xf32>
    %6 = vector.shape_cast %5 : vector<1x8x8xf32> to vector<8x8xf32>
    %7 = arith.mulf %6, %4 : vector<8x8xf32>
    %8 = arith.addf %3, %7 : vector<8x8xf32>
    %c0_7 = arith.constant 0 : index
    %c0_8 = arith.constant 0 : index
    %9 = vector.load %arg19[%c0_7, %c0_8] : memref<16x8xf32, #tpu.memory_space<vmem>>, vector<8x8xf32>
    tpu.vector_store %arg19[%c0_7, %c0_8], %8 {strides = array<i32>} : memref<16x8xf32, #tpu.memory_space<vmem>>, vector<8x8xf32>,
    %c1 = arith.constant 1 : index
    %c0_9 = arith.constant 0 : index
    %c0_10 = arith.constant 0 : index
    %10 = vector.load %arg3[%c1, %c0_9, %c0_10] : memref<2x8x8xf32, #tpu.memory_space<vmem>>, vector<1x8x8xf32>
    %11 = vector.shape_cast %10 : vector<1x8x8xf32> to vector<8x8xf32>
    %12 = arith.mulf %11, %4 : vector<8x8xf32>
    %13 = arith.addf %3, %12 : vector<8x8xf32>
    %c8 = arith.constant 8 : index
    %c0_11 = arith.constant 0 : index
    %14 = vector.load %arg19[%c8, %c0_11] : memref<16x8xf32, #tpu.memory_space<vmem>>, vector<8x8xf32>
    tpu.vector_store %arg19[%c8, %c0_11], %13 {strides = array<i32>} : memref<16x8xf32, #tpu.memory_space<vmem>>, vector<8x8xf32>,
    %c0_12 = arith.constant 0 : index
    %c0_13 = arith.constant 0 : index
    %15 = vector.load %arg19[%c0_12, %c0_13] : memref<16x8xf32, #tpu.memory_space<vmem>>, vector<16x8xf32>
    %16 = arith.truncf %15 : vector<16x8xf32> to vector<16x8xbf16>
    %c0_14 = arith.constant 0 : index
    %c0_15 = arith.constant 0 : index
    %17 = vector.load %arg9[%c0_14, %c0_15] : memref<8x32xbf16, #tpu.memory_space<vmem>>, vector<8x32xbf16>
    %cst = arith.constant dense<0.000000e+00> : vector<16x32xf32>
    %18 = tpu.matmul %16, %17, %cst {dimension_numbers = #tpu.dot_dimension_numbers<[1], [0], [0], [1], [0, 0, 1, 1], [], []>} : vector<16x8xbf16>, vector<8x32xbf16>, vector<16x32xf32> -> vector<16x32xf32>
    %c0_16 = arith.constant 0 : index
    %c0_17 = arith.constant 0 : index
    %19 = vector.load %arg10[%c0_16, %c0_17] : memref<1x32xf32, #tpu.memory_space<vmem>>, vector<1x32xf32>
    %20 = vector.broadcast %19 : vector<1x32xf32> to vector<16x32xf32>
    %21 = arith.addf %18, %20 : vector<16x32xf32>
    %cst_18 = arith.constant 0.000000e+00 : f32
    %22 = vector.broadcast %cst_18 : f32 to vector<16x32xf32>
    %23 = arith.maximumf %21, %22 : vector<16x32xf32>
    %24 = arith.truncf %23 : vector<16x32xf32> to vector<16x32xbf16>
    %c0_19 = arith.constant 0 : index
    %c0_20 = arith.constant 0 : index
    %25 = vector.load %arg11[%c0_19, %c0_20] : memref<32x32xbf16, #tpu.memory_space<vmem>>, vector<32x32xbf16>
    %cst_21 = arith.constant dense<0.000000e+00> : vector<16x32xf32>
    %26 = tpu.matmul %24, %25, %cst_21 {dimension_numbers = #tpu.dot_dimension_numbers<[1], [0], [0], [1], [0, 0, 1, 1], [], []>} : vector<16x32xbf16>, vector<32x32xbf16>, vector<16x32xf32> -> vector<16x32xf32>
    %c0_22 = arith.constant 0 : index
    %c0_23 = arith.constant 0 : index
    %27 = vector.load %arg12[%c0_22, %c0_23] : memref<1x32xf32, #tpu.memory_space<vmem>>, vector<1x32xf32>
    %28 = vector.broadcast %27 : vector<1x32xf32> to vector<16x32xf32>
    %29 = arith.addf %26, %28 : vector<16x32xf32>
    %30 = vector.extract_strided_slice %29 {offsets = [0, 0], sizes = [16, 16], strides = [1, 1]} : vector<16x32xf32> to vector<16x16xf32>
    %31 = arith.negf %30 : vector<16x16xf32>
    %32 = math.exp %31 : vector<16x16xf32>
    %cst_24 = arith.constant 1.000000e+00 : f32
    %33 = vector.broadcast %cst_24 : f32 to vector<16x16xf32>
    %34 = arith.addf %33, %32 : vector<16x16xf32>
    %35 = arith.divf %33, %34 : vector<16x16xf32>
    %36 = vector.extract_strided_slice %29 {offsets = [0, 16], sizes = [16, 16], strides = [1, 1]} : vector<16x32xf32> to vector<16x16xf32>
    %37 = vector.extract_strided_slice %35 {offsets = [0, 0], sizes = [8, 16], strides = [1, 1]} : vector<16x16xf32> to vector<8x16xf32>
    %38 = vector.extract_strided_slice %36 {offsets = [0, 0], sizes = [8, 16], strides = [1, 1]} : vector<16x16xf32> to vector<8x16xf32>
    %c0_25 = arith.constant 0 : index
    %c0_26 = arith.constant 0 : index
    %c0_27 = arith.constant 0 : index
    %39 = vector.load %arg15[%c0_25, %c0_26, %c0_27] : memref<2x8x16xf32, #tpu.memory_space<vmem>>, vector<1x8x16xf32>
    %40 = vector.shape_cast %39 : vector<1x8x16xf32> to vector<8x16xf32>
    %41 = vector.shape_cast %37 : vector<8x16xf32> to vector<1x8x16xf32>
    tpu.vector_store %arg15[%c0_25, %c0_26, %c0_27], %41 {strides = array<i32>} : memref<2x8x16xf32, #tpu.memory_space<vmem>>, vector<1x8x16xf32>,
    %c0_28 = arith.constant 0 : index
    %c0_29 = arith.constant 0 : index
    %c0_30 = arith.constant 0 : index
    %42 = vector.load %arg16[%c0_28, %c0_29, %c0_30] : memref<2x8x16xf32, #tpu.memory_space<vmem>>, vector<1x8x16xf32>
    %43 = vector.shape_cast %42 : vector<1x8x16xf32> to vector<8x16xf32>
    %44 = vector.shape_cast %38 : vector<8x16xf32> to vector<1x8x16xf32>
    tpu.vector_store %arg16[%c0_28, %c0_29, %c0_30], %44 {strides = array<i32>} : memref<2x8x16xf32, #tpu.memory_space<vmem>>, vector<1x8x16xf32>,
    %c0_31 = arith.constant 0 : index
    %c0_32 = arith.constant 0 : index
    %c0_33 = arith.constant 0 : index
    %45 = vector.load %arg4[%c0_31, %c0_32, %c0_33] : memref<2x8x16xf32, #tpu.memory_space<vmem>>, vector<1x8x16xf32>
    %46 = vector.shape_cast %45 : vector<1x8x16xf32> to vector<8x16xf32>
    %cst_34 = arith.constant 5.000000e-01 : f32
    %47 = vector.broadcast %cst_34 : f32 to vector<8x16xf32>
    %48 = arith.mulf %47, %38 : vector<8x16xf32>
    %49 = math.exp %48 : vector<8x16xf32>
    %50 = arith.mulf %46, %49 : vector<8x16xf32>
    %51 = arith.addf %37, %50 : vector<8x16xf32>
    %c0_35 = arith.constant 0 : index
    %c0_36 = arith.constant 0 : index
    %c0_37 = arith.constant 0 : index
    %52 = vector.load %arg14[%c0_35, %c0_36, %c0_37] : memref<2x8x16xf32, #tpu.memory_space<vmem>>, vector<1x8x16xf32>
    %53 = vector.shape_cast %52 : vector<1x8x16xf32> to vector<8x16xf32>
    %54 = vector.shape_cast %51 : vector<8x16xf32> to vector<1x8x16xf32>
    tpu.vector_store %arg14[%c0_35, %c0_36, %c0_37], %54 {strides = array<i32>} : memref<2x8x16xf32, #tpu.memory_space<vmem>>, vector<1x8x16xf32>,
    %55 = vector.extract_strided_slice %35 {offsets = [8, 0], sizes = [8, 16], strides = [1, 1]} : vector<16x16xf32> to vector<8x16xf32>
    %56 = vector.extract_strided_slice %36 {offsets = [8, 0], sizes = [8, 16], strides = [1, 1]} : vector<16x16xf32> to vector<8x16xf32>
    %c1_38 = arith.constant 1 : index
    %c0_39 = arith.constant 0 : index
    %c0_40 = arith.constant 0 : index
    %57 = vector.load %arg15[%c1_38, %c0_39, %c0_40] : memref<2x8x16xf32, #tpu.memory_space<vmem>>, vector<1x8x16xf32>
    %58 = vector.shape_cast %57 : vector<1x8x16xf32> to vector<8x16xf32>
    %59 = vector.shape_cast %55 : vector<8x16xf32> to vector<1x8x16xf32>
    tpu.vector_store %arg15[%c1_38, %c0_39, %c0_40], %59 {strides = array<i32>} : memref<2x8x16xf32, #tpu.memory_space<vmem>>, vector<1x8x16xf32>,
    %c1_41 = arith.constant 1 : index
    %c0_42 = arith.constant 0 : index
    %c0_43 = arith.constant 0 : index
    %60 = vector.load %arg16[%c1_41, %c0_42, %c0_43] : memref<2x8x16xf32, #tpu.memory_space<vmem>>, vector<1x8x16xf32>
    %61 = vector.shape_cast %60 : vector<1x8x16xf32> to vector<8x16xf32>
    %62 = vector.shape_cast %56 : vector<8x16xf32> to vector<1x8x16xf32>
    tpu.vector_store %arg16[%c1_41, %c0_42, %c0_43], %62 {strides = array<i32>} : memref<2x8x16xf32, #tpu.memory_space<vmem>>, vector<1x8x16xf32>,
    %c1_44 = arith.constant 1 : index
    %c0_45 = arith.constant 0 : index
    %c0_46 = arith.constant 0 : index
    %63 = vector.load %arg4[%c1_44, %c0_45, %c0_46] : memref<2x8x16xf32, #tpu.memory_space<vmem>>, vector<1x8x16xf32>
    %64 = vector.shape_cast %63 : vector<1x8x16xf32> to vector<8x16xf32>
    %cst_47 = arith.constant 5.000000e-01 : f32
    %65 = vector.broadcast %cst_47 : f32 to vector<8x16xf32>
    %66 = arith.mulf %65, %56 : vector<8x16xf32>
    %67 = math.exp %66 : vector<8x16xf32>
    %68 = arith.mulf %64, %67 : vector<8x16xf32>
    %69 = arith.addf %55, %68 : vector<8x16xf32>
    %c1_48 = arith.constant 1 : index
    %c0_49 = arith.constant 0 : index
    %c0_50 = arith.constant 0 : index
    %70 = vector.load %arg14[%c1_48, %c0_49, %c0_50] : memref<2x8x16xf32, #tpu.memory_space<vmem>>, vector<1x8x16xf32>
    %71 = vector.shape_cast %70 : vector<1x8x16xf32> to vector<8x16xf32>
    %72 = vector.shape_cast %69 : vector<8x16xf32> to vector<1x8x16xf32>
    tpu.vector_store %arg14[%c1_48, %c0_49, %c0_50], %72 {strides = array<i32>} : memref<2x8x16xf32, #tpu.memory_space<vmem>>, vector<1x8x16xf32>,
    return
  }
  func.func @transform_0(%arg0: i32, %arg1: i32) -> (i32, i32) {
    %c0_i32 = arith.constant 0 : i32
    %c0_i32_0 = arith.constant 0 : i32
    return %arg0, %c0_i32 : i32, i32
  }
  func.func @transform_1(%arg0: i32, %arg1: i32) -> (i32, i32, i32) {
    %c0_i32 = arith.constant 0 : i32
    %c0_i32_0 = arith.constant 0 : i32
    return %arg1, %arg0, %c0_i32 : i32, i32, i32
  }
  func.func @transform_2(%arg0: i32, %arg1: i32) -> (i32, i32, i32) {
    %c0_i32 = arith.constant 0 : i32
    %c0_i32_0 = arith.constant 0 : i32
    return %arg1, %arg0, %c0_i32 : i32, i32, i32
  }
  func.func @transform_3(%arg0: i32, %arg1: i32) -> (i32, i32) {
    %c0_i32 = arith.constant 0 : i32
    %c0_i32_0 = arith.constant 0 : i32
    %c0_i32_1 = arith.constant 0 : i32
    return %c0_i32, %c0_i32_0 : i32, i32
  }
  func.func @transform_4(%arg0: i32, %arg1: i32) -> (i32, i32) {
    %c0_i32 = arith.constant 0 : i32
    %c0_i32_0 = arith.constant 0 : i32
    %c0_i32_1 = arith.constant 0 : i32
    return %c0_i32, %c0_i32_0 : i32, i32
  }
  func.func @transform_5(%arg0: i32, %arg1: i32) -> (i32, i32) {
    %c0_i32 = arith.constant 0 : i32
    %c0_i32_0 = arith.constant 0 : i32
    %c0_i32_1 = arith.constant 0 : i32
    return %c0_i32, %c0_i32_0 : i32, i32
  }
  func.func @transform_6(%arg0: i32, %arg1: i32) -> (i32, i32) {
    %c0_i32 = arith.constant 0 : i32
    %c0_i32_0 = arith.constant 0 : i32
    %c0_i32_1 = arith.constant 0 : i32
    return %c0_i32, %c0_i32_0 : i32, i32
  }
  func.func @transform_7(%arg0: i32, %arg1: i32) -> (i32, i32) {
    %c0_i32 = arith.constant 0 : i32
    %c0_i32_0 = arith.constant 0 : i32
    %c0_i32_1 = arith.constant 0 : i32
    return %c0_i32, %c0_i32_0 : i32, i32
  }
  func.func @transform_8(%arg0: i32, %arg1: i32) -> (i32, i32) {
    %c0_i32 = arith.constant 0 : i32
    %c0_i32_0 = arith.constant 0 : i32
    %c0_i32_1 = arith.constant 0 : i32
    return %c0_i32, %c0_i32_0 : i32, i32
  }
  func.func @transform_9(%arg0: i32, %arg1: i32) -> (i32, i32) {
    %c0_i32 = arith.constant 0 : i32
    %c0_i32_0 = arith.constant 0 : i32
    %c0_i32_1 = arith.constant 0 : i32
    return %c0_i32, %c0_i32_0 : i32, i32
  }
  func.func @transform_10(%arg0: i32, %arg1: i32) -> (i32, i32) {
    %c0_i32 = arith.constant 0 : i32
    %c0_i32_0 = arith.constant 0 : i32
    %c0_i32_1 = arith.constant 0 : i32
    return %c0_i32, %c0_i32_0 : i32, i32
  }
  func.func @transform_11(%arg0: i32, %arg1: i32) -> (i32, i32) {
    %c0_i32 = arith.constant 0 : i32
    %c0_i32_0 = arith.constant 0 : i32
    return %arg0, %c0_i32 : i32, i32
  }
  func.func @transform_12(%arg0: i32, %arg1: i32) -> (i32, i32, i32) {
    %c0_i32 = arith.constant 0 : i32
    %c0_i32_0 = arith.constant 0 : i32
    return %arg1, %arg0, %c0_i32 : i32, i32, i32
  }
  func.func @transform_13(%arg0: i32, %arg1: i32) -> (i32, i32, i32) {
    %c0_i32 = arith.constant 0 : i32
    %c0_i32_0 = arith.constant 0 : i32
    return %arg1, %arg0, %c0_i32 : i32, i32, i32
  }
  func.func @transform_14(%arg0: i32, %arg1: i32) -> (i32, i32, i32) {
    %c0_i32 = arith.constant 0 : i32
    %c0_i32_0 = arith.constant 0 : i32
    return %arg1, %arg0, %c0_i32 : i32, i32, i32
  }
}

</mosaic_0001>

<bundles_post_ra>
// kernel: tpu_custom_call.1
= control target key start
LH: loop header
LB: loop body
LE: loop exit
PB: predicated region body
PF: predicated region fallthrough
CT: control target
= control target key end

     0   :  { %s2309_s0 = inlined_call_operand.vmem [shape: f32[8,16], index: 0, kind: input, shape index: {}]   ;;  %s2310_s1 = inlined_call_operand.hbm [shape: f32[4,8,8], index: 1, kind: input, shape index: {}]   ;;  %s2311_s2 = inlined_call_operand.hbm [shape: f32[4,8,16], index: 2, kind: input, shape index: {}]   ;;  %s2312_s3 = inlined_call_operand.hbm [shape: bf16[16,32], index: 3, kind: input, shape index: {}]   ;;  %s2313_s4 = inlined_call_operand.hbm [shape: f32[1,32], index: 4, kind: input, shape index: {}]   ;;  %s2314_s5 = inlined_call_operand.vmem [shape: bf16[32,16], index: 5, kind: input, shape index: {}]   ;;  %s2315_s6 = inlined_call_operand.hbm [shape: f32[1,16], index: 6, kind: input, shape index: {}]   ;;  %s2316_s7 = inlined_call_operand.vmem [shape: bf16[8,32], index: 7, kind: input, shape index: {}]   ;;  %s2317_s8 = inlined_call_operand.vmem [shape: f32[1,32], index: 8, kind: input, shape index: {}]   ;;  %s2318_s9 = inlined_call_operand.vmem [shape: bf16[32,32], index: 9, kind: input, shape index: {}]   ;;  %s2319_s10 = inlined_call_operand.vmem [shape: f32[1,32], index: 10, kind: input, shape index: {}]   ;;  %s2320_s11 = inlined_call_operand.hbm [shape: f32[8,16], index: 11, kind: output, shape index: {0}]   ;;  %s2321_s12 = inlined_call_operand.hbm [shape: f32[4,8,16], index: 12, kind: output, shape index: {1}]   ;;  %s2322_s13 = inlined_call_operand.hbm [shape: f32[4,8,16], index: 13, kind: output, shape index: {2}]   ;;  %s2323_s14 = inlined_call_operand.hbm [shape: f32[4,8,16], index: 14, kind: output, shape index: {3}]  }
   0x1   :  { %2336 = sst [smem:[#allocation33_spill]] %s2310_s1 }
   0x2   :  { %2337 = sst [smem:[#allocation34_spill]] %s2312_s3 }
   0x3   :  { %2338 = sst [smem:[#allocation35_spill]] %s2313_s4 }
   0x4   :  { %2339 = sst [smem:[#allocation36_spill]] %s2315_s6 }
   0x5   :  { %2340 = sst [smem:[#allocation37_spill]] %s2319_s10 }
   0x6   :  { %2341 = sst [smem:[#allocation38_spill]] %s2320_s11 }
   0x7   :  { %2342 = sst [smem:[#allocation39_spill]] %s2321_s12 }
   0x8   :  { %2343 = sst [smem:[#allocation40_spill]] %s2322_s13 }
   0x9   :  { %2344 = sst [smem:[#allocation41_spill]] %s2323_s14 }
   0xa   :  { %20 = vsyncpa [#allocation6], 0 }
   0xb   :  { %22 = vsyncpa [#allocation6 + $0x1], 0 }
   0xc   :  { %23 = vsyncpa [#allocation9], 0 }
   0xd   :  { %25 = vsyncpa [#allocation9 + $0x1], 0 }
   0xe   :  { %26 = vsyncpa [#allocation12], 0 }
   0xf   :  { %27 = vsyncpa [#allocation7], 0 }
  0x10   :  { %28 = vsyncpa [#allocation16], 0 }
  0x11   :  { %30 = vsyncpa [#allocation16 + $0x1], 0 }
  0x12   :  { %31 = vsyncpa [#allocation19], 0 }
  0x13   :  { %33 = vsyncpa [#allocation19 + $0x1], 0  ;;  %s1930_s29 = smov 0   ;;  %s1932_s30 = smov 0  }
  0x14   :  { %s1934_s15 = smov 0   ;;  %s1936_s16 = smov 0  }
  0x15   :  { %s1938_s17 = smov 0   ;;  %s1940_s18 = smov 0  }
  0x16 LB: > { %2345 = sst [smem:[#allocation27_spill]] %s1812_s29  ;;  %s1961_s19 = sadd.s32 4294967295, %s1832_s18   ;;  %s1832_s18 = sphi %s1940_s18, %s39_s18   ;;  %s1828_s17 = sphi %s1938_s17, %s2388_s17   ;;  %s1824_s16 = sphi %s1936_s16, %s2387_s16   ;;  %s1820_s15 = sphi %s1934_s15, %s2383_s15   ;;  %s1816_s30 = sphi %s1932_s30, %s2386_s30   ;;  %s1812_s29 = sphi %s1930_s29, %s2385_s29  }
  0x17   : > { %2346 = sst [smem:[#allocation28_spill]] %s1820_s15  ;;  %s2324_s20 = sadd.s32 4294967294, %s1832_s18  }
  0x18   : > { %p99_p0 = scmp.ne.s32.totalorder %s1816_s30, %s1812_s29  ;;  %p2329_p1 = scmp.eq.s32.totalorder %s1961_s19, 0 }
  0x19   : > { %p353_p3 = scmp.eq.s32.totalorder %s2324_s20, 1  ;;  %p1278_p5 = scmp.ge.s32.totalorder %s1832_s18, 1 }
  0x1a   : > { %p1972_p4 = por %p2329_p1, %p99_p0  ;;  %p416_p7 = scmp.lt.s32.totalorder %s1832_s18, 3 }
  0x1b   : > { %p1977_p6 = por %p353_p3, %p99_p0  ;;  %s1834_s24 = smov [#allocation10]  }
  0x1c   : > { %p1982_p8 = pnand %p1278_p5, %p416_p7  ;;  %s435_s25 = sshll.u32 %s1834_s24, 4  ;;  %s436_s25 = int_to_ptr.vmem [resolvable:$true] %s435_s25 }
  0x1d   : > { %s2348_s22 = scalar_select %p1977_p6, 1, 0 }
  0x1e   : > { %p1402_p9 = pneg %p1982_p8  ;;  %s1835_s27 = smov [#allocation11]  }
  0x1f   : > { %2349 = sst [smem:[#allocation29_spill]] %s2348_s22  ;;  %s449_s28 = sshll.u32 %s1835_s27, 4  ;;  %s450_s28 = int_to_ptr.vmem [resolvable:$true] %s449_s28 }
  0x20   : > { %p1991_p11 = pnand %p1402_p9, %p2329_p1  ;;  %s1836_s20 = smov [#allocation13]  }
  0x21   : > { %s463_s29 = sshll.u32 %s1836_s20, 4  ;;  %s1533_s22 = scalar_lea.vmem %s436_s25, 128  ;;  %s464_s29 = int_to_ptr.vmem [resolvable:$true] %s463_s29 }
  0x22   : > { %p1524_p12 = pneg %p1991_p11  ;;  %p1534_p13 = scmp.ne.s32.totalorder %s436_s25, %s1533_s22 }
  0x23   : > { %p1541_p5 = scmp.lt.s32.totalorder %s436_s25, %s436_s25  ;;  %p1542_p7 = scmp.lt.s32.totalorder %s1533_s22, %s1533_s22 }
  0x24   : > { %p1536_p0 = pnand %p1534_p13, %p1524_p12 }
  0x25   : > { %p1543_p9 = por %p1542_p7, %p1541_p5 }
  0x26   : > { %p1537_p3 = pneg %p1536_p0 }
  0x28   : > { %p1544_p10 = pnand %p1543_p9, %p1537_p3 }
  0x2a   : > { %1547 = shalt.err (!%p1544_p10)
}
  0x2b   : > { %s1837_s24 = smov 64   ;;  %s1838_s27 = smov 4  }
  0x2c   : > { %s2352_s3 = sld [smem:[#allocation34_spill]]  ;;  %s1559_s12 = scalar_lea.vmem %s450_s28, 16 }
  0x2d   : > { %p1560_p1 = scmp.ne.s32.totalorder %s450_s28, %s1559_s12  ;;  %s1566_s14 = scalar_lea.vmem %s450_s28, 32 }
  0x2e   : > { %p1567_p2 = scmp.lt.s32.totalorder %s450_s28, %s450_s28  ;;  %p1568_p5 = scmp.lt.s32.totalorder %s1566_s14, %s1559_s12 }
  0x2f   : > { %p1562_p13 = pnand %p1560_p1, %p1524_p12 }
  0x30   : > { %p1569_p3 = por %p1568_p5, %p1567_p2 }
  0x31   : > { %p1563_p0 = pneg %p1562_p13 }
  0x32   : > { %1405 = dma.hbm_to_vmem [thread:$0]  (!%p1991_p11), %s2352_s3, 128, %s436_s25, [#allocation9], %s1837_s24, %s1837_s24, %s1838_s27  }
  0x33   : > { %p1570_p10 = pnand %p1569_p3, %p1563_p0 }
  0x35   : > { %1573 = shalt.err (!%p1570_p10)
}
  0x36   : > { %s2353_s4 = sld [smem:[#allocation35_spill]]  ;;  %s1585_s13 = scalar_lea.vmem %s464_s29, 16 }
  0x37   : > { %p1586_p7 = scmp.ne.s32.totalorder %s464_s29, %s1585_s13  ;;  %s1592_s25 = scalar_lea.vmem %s464_s29, 32 }
  0x38   : > { %p1593_p13 = scmp.lt.s32.totalorder %s464_s29, %s464_s29  ;;  %p1594_p6 = scmp.lt.s32.totalorder %s1592_s25, %s1585_s13 }
  0x39   : > { %p1588_p1 = pnand %p1586_p7, %p1524_p12 }
  0x3a   : > { %p1595_p2 = por %p1594_p6, %p1593_p13 }
  0x3b   : > { %p1589_p9 = pneg %p1588_p1 }
  0x3c   : > { %1408 = dma.hbm_to_vmem [thread:$0]  (!%p1991_p11), %s2353_s4, 16, %s450_s28, [#allocation12]  }
  0x3d   : > { %p1596_p0 = pnand %p1595_p2, %p1589_p9 }
  0x3f   : > { %1599 = shalt.err (!%p1596_p0)
}
  0x40   : > { %s2354_s6 = sld [smem:[#allocation36_spill]]  ;;  %s86_s11 = sadd.s32 1, %s1820_s15 }
  0x41   : > { %s48_s28 = sadd.s32 1, %s1828_s17  ;;  %p93_p6 = scmp.ne.s32.totalorder %s1820_s15, %s1816_s30 }
  0x42   : > { %p49_p12 = scmp.ge.s32.totalorder %s48_s28, 2  ;;  %p94_p5 = scmp.eq.s32.totalorder %s1832_s18, 0 }
  0x43   : > { %p2355_p3 = scmp.eq.s32.totalorder %s1961_s19, 1  ;;  %p1432_p7 = scmp.lt.s32.totalorder %s1832_s18, 2 }
  0x44   : > { %s2390_s28 = smov (%p49_p12, %s48_s28), 0  ;;  %p95_p1 = por %p94_p5, %p93_p6 }
  0x45   : > { %p2028_p10 = por %p2355_p3, %p93_p6  ;;  %2358 = sst [smem:[#allocation31_spill]] %s2390_s28 }
  0x46   : > { %1411 = dma.hbm_to_vmem [thread:$0]  (!%p1991_p11), %s2354_s6, 16, %s464_s29, [#allocation12]  }
  0x47   : > { %s2356_s26 = scalar_select %p2028_p10, 1, 0 }
  0x48   : > { %s486_s24 = sand.u32 1, %s1820_s15   ;;  %s81_s27 = ssub.s32 %s1828_s17, %s2390_s28 }
  0x49   : > { %2357 = sst [smem:[#allocation30_spill]] %s2356_s26  ;;  %p84_p11 = scmp.eq.s32.totalorder %s81_s27, 0 }
  0x4a   : > { %s2038_s29 = sshll.u32 %s486_s24, 4  ;;  %s2331_s20 = sshll.u32 %s1828_s17, 8 }
  0x4b   : > { %s2042_s22 = scalar_select %p84_p11, %s1820_s15, %s86_s11  }
  0x4c   : > { %s2360_s1 = sld [smem:[#allocation33_spill]]  ;;  %s490_s14 = scalar_lea.vmem [#allocation5], %s2038_s29 }
  0x4d   : > { %2359 = sst [smem:[#allocation32_spill]] %s2042_s22  ;;  %s498_s3 = sshll.u32 %s490_s14, 4  ;;  %s499_s3 = int_to_ptr.vmem [resolvable:$true] %s498_s3 }
  0x4e   : > { %p2052_p9 = pnand %p1432_p7, %p95_p1  ;;  %s487_s27 = scalar_lea.sflag [#allocation6], %s486_s24 }
  0x4f   : > { %s1613_s11 = scalar_lea.vmem %s499_s3, 256  ;;  %s1839_s13 = smov [#allocation5]  }
  0x50   : > { %p1602_p13 = pneg %p2052_p9  ;;  %p1614_p2 = scmp.ne.s32.totalorder %s499_s3, %s1613_s11 }
  0x51   : > { %s1618_s25 = sshll.u32 %s1839_s13, 4  ;;  %s1619_s25 = int_to_ptr.vmem [resolvable:$false] %s1618_s25 }
  0x52   : > { %s497_s12 = scalar_lea.hbm %s2360_s1, %s2331_s20  ;;  %p1616_p0 = pnand %p1614_p2, %p1602_p13 }
  0x53   : > { %s1620_s14 = scalar_lea.vmem %s1619_s25, 512  ;;  %p1621_p12 = scmp.lt.s32.totalorder %s499_s3, %s1619_s25 }
  0x54   : > { %p1617_p6 = pneg %p1616_p0  ;;  %p1622_p5 = scmp.lt.s32.totalorder %s1620_s14, %s1613_s11 }
  0x56   : > { %p1623_p3 = por %p1622_p5, %p1621_p12 }
  0x58   : > { %p1624_p7 = pnand %p1623_p3, %p1617_p6 }
  0x5a   : > { %1627 = shalt.err (!%p1624_p7)
}
  0x5b   : > { %s1840_s20 = smov 128   ;;  %s1841_s24 = smov 8  }
  0x5c   : > { %1415 = dma.hbm_to_vmem [thread:$0]  (!%p2052_p9), %s497_s12, 256, %s499_s3, %s487_s27, %s1840_s20, %s1840_s20, %s1841_s24  }
  0x5d   : > { %s2362_s1 = sshll.u32 %s1828_s17, 8  ;;  %s512_s22 = scalar_lea.vmem [#allocation8], %s2038_s29 }
  0x5e   : > { %s519_s13 = scalar_lea.hbm %s2311_s2, %s2362_s1  ;;  %s520_s25 = sshll.u32 %s512_s22, 4  ;;  %s521_s25 = int_to_ptr.vmem [resolvable:$true] %s520_s25 }
  0x5f   : > { %s508_s11 = sand.u32 1, %s1832_s18   ;;  %s1641_s15 = scalar_lea.vmem %s521_s25, 256 }
  0x60   : > { %s509_s14 = scalar_lea.sflag [#allocation9], %s508_s11  ;;  %p1642_p1 = scmp.ne.s32.totalorder %s521_s25, %s1641_s15 }
  0x61   : > { %s1842_s26 = smov [#allocation8]  }
  0x62   : > { %p1644_p11 = pnand %p1642_p1, %p1602_p13  ;;  %s1646_s10 = sshll.u32 %s1842_s26, 4  ;;  %s1647_s10 = int_to_ptr.vmem [resolvable:$false] %s1646_s10 }
  0x63   : > { %s1648_s3 = scalar_lea.vmem %s1647_s10, 512  ;;  %p1649_p0 = scmp.lt.s32.totalorder %s521_s25, %s1647_s10 }
  0x64   : > { %p1645_p2 = pneg %p1644_p11  ;;  %p1650_p6 = scmp.lt.s32.totalorder %s1648_s3, %s1641_s15 }
  0x66   : > { %p1651_p12 = por %p1650_p6, %p1649_p0 }
  0x68   : > { %p1652_p5 = pnand %p1651_p12, %p1645_p2 }
  0x6a   : > { %1655 = shalt.err (!%p1652_p5)
}
  0x6b   : > { %1418 = dma.hbm_to_vmem [thread:$0]  (!%p2052_p9), %s519_s13, 256, %s521_s25, %s509_s14, %s1840_s20, %s1840_s20, %s1841_s24  }
  0x6c   : > { %532 = sbr.rel (%p1982_p8) target bundleno = 1266 (0x4f2), region = 64  ;;  %s2078_s1 = sand.u32 (!%p1982_p8), 1, %s1816_s30  }
  0x6d   : > { %s2081_s6 = sshll.u32 (!%p1982_p8), %s2078_s1, 4  ;;  %s535_s10 = scalar_lea.sflag (!%p1982_p8), [#allocation6], %s2078_s1 }
  0x6e   : > { %s538_s15 = scalar_lea.vmem (!%p1982_p8), [#allocation5], %s2081_s6 }
  0x71   : > { %1783 = dma.done.wait (%p1972_p4), %s535_s10, 256  }
  0x72   : > { %1785 = vsyncadd (%p1972_p4), %s535_s10, 4294967040  ;;  %s543_s4 = sand.u32 1, %s1961_s19   ;;  %s547_s28 = scalar_lea.vmem [#allocation8], %s2081_s6 }
  0x73   : > { %s544_s23 = scalar_lea.sflag [#allocation9], %s543_s4 }
  0x74   : > { %1787 = dma.done.wait (%p1972_p4), %s544_s23, 256  }
  0x75   : > { %1789 = vsyncadd (%p1972_p4), %s544_s23, 4294967040  ;;  %p2363_p8 = scmp.eq.s32.totalorder %s1961_s19, 0 }
  0x77   : > { %1791 = dma.done.wait (%p2363_p8), [#allocation9], 128   ;;  %p2364_p9 = pmov %p2363_p8 }
  0x78   : > { %p2365_p13 = pmov %p2363_p8 }
  0x79   : > { %1793 = vsyncadd (%p2364_p9), [#allocation9], 4294967168 }
  0x7a   : > { %1795 = dma.done.wait (%p2365_p13), [#allocation12], 32   ;;  %p2366_p3 = pmov %p2363_p8 }
  0x7b   : > { %s2106_s26 = scalar_lea.vmem [#allocation15], %s2081_s6  ;;  %s2109_s29 = scalar_lea.vmem [#allocation17], %s2081_s6 }
  0x7c   : > { %1797 = vsyncadd (%p2366_p3), [#allocation12], 4294967264  ;;  %s2112_s21 = scalar_lea.vmem [#allocation18], %s2081_s6  ;;  %p1299_p4 = scmp.ne.s32.totalorder %s1824_s16, 0 }
  0x7d   : > { %s1845_s25 = smov (!%p1299_p4), 120  }
  0x7e   : > { %636 = sbr.rel (%p1299_p4) target bundleno = 664 (0x298), region = 88 }
  0x83   : > { %v1503_v0 = vld [vmem:[#allocation10] sm:$0xff]   ;;  %v1843_v1 = vmov 0.0   ;;  %vm654_vm0 = vcmask 130048   ;;  %vm1844_vm1 = vmmov 0   ;;  %v1504_v4 = vld [vmem:[%s2314_s5 + $0x8] sm:$0xff]   ;;  %vm723_vm2 = vcmask 261120  }
  0x84   : > { %1348 = vmatprep.subr.bf16.mxu0 %v1843_v1  ;;  %v637_v2 = vld [vmem:[%s2309_s0] sm:$0xff]  ;;  %1354 = vmatprep.subr.bf16.mxu1 %v1843_v1  ;;  %v1300_v6 = vld [vmem:[#allocation11] ss:$0 sm:$0xff]  ;;  %v1303_v14 = vld [vmem:[#allocation13] ss:$0 sm:$0xff]  ;;  %vm768_vm3 = vcmask 64512  }
  0x85   : > { %1349 = vmatpush3.bf16.msra.mxu0 %v1503_v0  ;;  %1350 = vmatprep.mubr.msk.bf16.mxu0 %vm1844_vm1, %v1843_v1  ;;  %v638_v3 = vpack.c.bf16 %v637_v2, %v637_v2  ;;  %v1505_v5 = vld [vmem:[%s2314_s5] sm:$0xff]  }
  0x86   : > { %1358 = vmatprep.mubr.msk.bf16.mxu1 %vm1844_vm1, %v1843_v1  ;;  %1355 = vmatpush3.bf16.msra.mxu1 %v1504_v4 }
  0x87   : > { %1356 = vmatprep.subr.bf16.mxu1 %v1843_v1 }
  0x88   : > { %1351 = vmatmul.mubr.msk.bf16.vlgmr.msra.gmra.mxu0 %vm654_vm0, %v638_v3 }
  0x8a   : > { %1357 = vmatpush3.bf16.msra.mxu1 %v1505_v5 }
 0x148   : > { %v692_v7 = vpop.f32.mrf.mxu0 }
 0x149   : > { %v693_v8 = vadd.f32 %v1300_v6, %v692_v7 }
 0x14a   : > { %v1352_v9 = vpop.f32.mrf.mxu0 }
 0x14b   : > { %v698_v10 = vmax.f32 %v693_v8, 0.0 }
 0x14c   : > { %v695_v11 = vpop.f32.mrf.mxu0 }
 0x14d   : > { %v699_v12 = vpack.c.bf16 %v698_v10, %v698_v10 }
 0x14e   : > { %v1353_v13 = vpop.f32.mrf.mxu0 }
 0x14f   : > { %1359 = vmatmul.mubr.msk.bf16.vlgmr.msra.gmra.mxu1 %vm723_vm2, %v699_v12 }
 0x20f   : > { %v761_v15 = vpop.f32.mrf.mxu1 }
 0x210   : > { %v762_v16 = vadd.f32 %v1303_v14, %v761_v15 }
 0x211   : > { %v1360_v17 = vpop.f32.mrf.mxu1 }
 0x212   : > { %767 = vst.msk [vmem:[#allocation14] sm:$0xff] %vm654_vm0, %v762_v16  ;;  %v770_v18 = vmul.f32 0.5, %v762_v16 }
 0x213   : > { %769 = vst.msk [vmem:[#allocation2] sm:$0xff] %vm768_vm3, %v762_v16  ;;  %v764_v19 = vpop.f32.mrf.mxu1 }
 0x214   : > { %v771_v20 = vmul.f32 1.442695, %v770_v18 }
 0x215   : > { %v1361_v21 = vpop.f32.mrf.mxu1 }
 0x216   : > { %1506 = vpow2.f32 %v771_v20 }
 0x223   : > { %v1507_v22 = vpop.eup %1506 }
 0x224   : > { %774 = vrot.lane.b32.xlu0 %v1507_v22, %s1845_s25 }
 0x296   : > { %v775_v23 = vpop.permute.xlu0 %774 }
 0x297   : > { %777 = vst.msk [vmem:[#allocation3] sm:$0xff] %vm768_vm3, %v775_v23 }
 0x298 PF: > { %v793_v24 = vld [vmem:[%s2316_s7] sm:$0xf]  ;;  %vm804_vm4 = vcmask 1043456   ;;  %v1846_v26 = vmov 0.0   ;;  %vm1847_vm5 = vmmov 0   ;;  %v1307_v30 = vld [vmem:[%s538_s15 + $0x8] sm:$0xff] }
 0x299   : > { %v778_v25 = vld [vmem:[#allocation2] sm:$0xff]  ;;  %1362 = vmatprep.subr.bf16.mxu0 %v1846_v26  ;;  %v806_v27 = vsel %vm804_vm4, %v793_v24, 0  ;;  %1364 = vmatprep.mubr.msk.bf16.mxu0 %vm1847_vm5, %v1846_v26  ;;  %vm783_vm6 = vcmask 64512   ;;  %v1508_v38 = vld [vmem:[%s2318_s9 + $0x8] sm:$0xff]   ;;  %vm875_vm7 = vcmask 261120   ;;  %s2367_s24 = sld [smem:[#allocation37_spill]] }
 0x29a   : > { %v780_v29 = vld [vmem:[%s538_s15] sm:$0xff]  ;;  %1363 = vmatpush3.bf16.msra.mxu0 %v806_v27  ;;  %1368 = vmatprep.subr.bf16.mxu1 %v1846_v26  ;;  %s1848_s13 = smov 112   ;;  %s1849_s25 = smov [#allocation14]  }
 0x29b   : > { %1372 = vmatprep.mubr.msk.bf16.mxu1 %vm1847_vm5, %v1846_v26  ;;  %1369 = vmatpush3.bf16.msra.mxu1 %v1508_v38  ;;  %v1509_v39 = vld [vmem:[%s2318_s9] sm:$0xff]   ;;  %s995_s11 = sshll.u32 %s1849_s25, 4  ;;  %p2368_p1 = scmp.eq.s32.totalorder %s1961_s19, 1  ;;  %s996_s11 = int_to_ptr.vmem [resolvable:$true] %s995_s11 }
 0x29c   : > { %1370 = vmatprep.subr.bf16.mxu1 %v1846_v26  ;;  %v1308_v40 = vld [vmem:[%s2317_s8] ss:$0 sm:$0xff]  ;;  %s1656_s14 = scalar_lea.vmem %s996_s11, 128  ;;  %p1663_p0 = scmp.lt.s32.totalorder %s996_s11, %s996_s11 }
 0x29d   : > { %p1657_p7 = scmp.ne.s32.totalorder %s996_s11, %s1656_s14  ;;  %p1664_p6 = scmp.lt.s32.totalorder %s1656_s14, %s1656_s14 }
 0x29e   : > { %v779_v28 = vld [vmem:[#allocation3] sm:$0xff] }
 0x29f   : > { %v781_v31 = vmul.f32 %v780_v29, %v779_v28  ;;  %v787_v32 = vmul.f32 %v1307_v30, %v779_v28  ;;  %1371 = vmatpush3.bf16.msra.mxu1 %v1509_v39  ;;  %v1310_v50 = vld [vmem:[%s2367_s24] ss:$0 sm:$0xff]  ;;  %p1658_p11 = pnand %p1657_p7, %p2368_p1  ;;  %p1665_p12 = por %p1664_p6, %p1663_p0 }
 0x2a1   : > { %v782_v33 = vadd.f32 %v781_v31, %v778_v25  ;;  %v788_v34 = vadd.f32 %v787_v32, %v778_v25  ;;  %p1659_p2 = pneg %p1658_p11 }
 0x2a3   : > { %784 = vst.msk [vmem:[#allocation4] sm:$0xff] %vm783_vm6, %v782_v33  ;;  %789 = vst.msk [vmem:[#allocation4 + $0x8] sm:$0xff] %vm783_vm6, %v788_v34  ;;  %p1666_p5 = pnand %p1665_p12, %p1659_p2 }
 0x2aa   : > { %v790_v35 = vld [vmem:[#allocation4] sm:$0xff]  ;;  %v791_v36 = vld [vmem:[#allocation4 + $0x8] sm:$0xff] }
 0x2ab   : > { %v792_v37 = vpack.c.bf16 %v791_v36, %v790_v35 }
 0x2ad   : > { %1365 = vmatmul.mubr.msk.bf16.vlgmr.msra.gmra.mxu0 %vm783_vm6, %v792_v37 }
 0x36d   : > { %v842_v41 = vpop.f32.mrf.mxu0 }
 0x36e   : > { %v843_v43 = vadd.f32 %v1308_v40, %v842_v41 }
 0x36f   : > { %v1366_v42 = vpop.f32.mrf.mxu0 }
 0x370   : > { %v849_v47 = vmax.f32 %v843_v43, 0.0 }
 0x371   : > { %v845_v44 = vpop.f32.mrf.mxu0 }
 0x372   : > { %v846_v45 = vadd.f32 %v1308_v40, %v845_v44 }
 0x373   : > { %v1367_v46 = vpop.f32.mrf.mxu0 }
 0x374   : > { %v850_v48 = vmax.f32 %v846_v45, 0.0 }
 0x376   : > { %v851_v49 = vpack.c.bf16 %v850_v48, %v849_v47 }
 0x378   : > { %1373 = vmatmul.mubr.msk.bf16.vlgmr.msra.gmra.mxu1 %vm875_vm7, %v851_v49 }
 0x438   : > { %v913_v51 = vpop.f32.mrf.mxu1 }
 0x439   : > { %v914_v52 = vadd.f32 %v1310_v50, %v913_v51 }
 0x43a   : > { %v1374_v53 = vpop.f32.mrf.mxu1 }
 0x43b   : > { %v1314_v54 = vmul.f32 -1.442695, %v914_v52  ;;  %v940_v55 = vmul.f32 0.5, %v914_v52  ;;  %935 = vrot.lane.b32.xlu1 %v914_v52, %s1848_s13 }
 0x43c   : > { %v916_v56 = vpop.f32.mrf.mxu1 }
 0x43d   : > { %1510 = vpow2.f32 %v1314_v54  ;;  %v941_v57 = vmul.f32 1.442695, %v940_v55  ;;  %v917_v58 = vadd.f32 %v1310_v50, %v916_v56 }
 0x43e   : > { %v1375_v59 = vpop.f32.mrf.mxu1 }
 0x43f   : > { %1512 = vpow2.f32 %v941_v57  ;;  %v1315_v60 = vmul.f32 -1.442695, %v917_v58  ;;  %v960_v61 = vmul.f32 0.5, %v917_v58  ;;  %953 = vrot.lane.b32.xlu1 %v917_v58, %s1848_s13 }
 0x441   : > { %1514 = vpow2.f32 %v1315_v60  ;;  %v961_v62 = vmul.f32 1.442695, %v960_v61 }
 0x443   : > { %1516 = vpow2.f32 %v961_v62 }
 0x44a   : > { %v1511_v63 = vpop.eup %1510 }
 0x44b   : > { %v926_v0 = vadd.f32 1.0, %v1511_v63 }
 0x44c   : > { %v1513_v1 = vpop.eup %1512 }
 0x44d   : > { %1518 = vrcp.f32 %v926_v0  ;;  %944 = vrot.lane.b32.xlu0 %v1513_v1, %s1848_s13 }
 0x44e   : > { %1669 = shalt.err (!%p1666_p5)
}
 0x44f   : > { %p2369_p8 = pmov %p2368_p1  ;;  %s2370_s15 = sld [smem:[#allocation38_spill]]  ;;  %v1515_v2 = vpop.eup %1514  ;;  %vm932_vm8 = vcmask 130048  }
 0x450   : > { %v927_v3 = vadd.f32 1.0, %v1515_v2  ;;  %v1517_v4 = vpop.eup %1516  ;;  %s2161_s20 = sshll.u32 %s1824_s16, 8  ;;  %s1043_s22 = sshll.u32 %s2112_s21, 4  ;;  %s2172_s22 = int_to_ptr.vmem [resolvable:$true] %s1043_s22 }
 0x451   : > { %964 = vrot.lane.b32.xlu0 %v1517_v4, %s1848_s13  ;;  %s2372_s24 = sld [smem:[#allocation41_spill]]  ;;  %s982_s13 = scalar_lea.sflag [#allocation19], %s2078_s1 }
 0x452   : > { %1520 = vrcp.f32 %v927_v3  ;;  %s1680_s16 = scalar_lea.vmem %s2172_s22, 256 }
 0x453   : > { %p1681_p9 = scmp.ne.s32.totalorder %s2172_s22, %s1680_s16 }
 0x455   : > { %1393 = dma.vmem_to_hbm [thread:$0]  (%p2369_p8), %s996_s11, 128, %s2370_s15, [#allocation7]  }
 0x456   : > { %p1682_p13 = pnand %p1681_p9, %p2028_p10  ;;  %s1850_s11 = smov [#allocation18]  }
 0x457   : > { %s2170_s25 = scalar_lea.hbm %s2372_s24, %s2161_s20  ;;  %s1684_s14 = sshll.u32 %s1850_s11, 4  ;;  %s1685_s14 = int_to_ptr.vmem [resolvable:$false] %s1684_s14 }
 0x458   : > { %p1683_p3 = pneg %p1682_p13  ;;  %s1686_s3 = scalar_lea.vmem %s1685_s14, 512 }
 0x459   : > { %p1687_p4 = scmp.lt.s32.totalorder %s2172_s22, %s1685_s14  ;;  %p1688_p7 = scmp.lt.s32.totalorder %s1686_s3, %s1680_s16 }
 0x45a   : > { %v1519_v5 = vpop.eup %1518 }
 0x45b   : > { %933 = vst.msk [vmem:[%s2109_s29] sm:$0xff] %vm932_vm8, %v1519_v5  ;;  %p1689_p1 = por %p1688_p7, %p1687_p4 }
 0x45d   : > { %p1690_p11 = pnand %p1689_p1, %p1683_p3 }
 0x45f   : > { %v1521_v6 = vpop.eup %1520 }
 0x460   : > { %1316 = vst.msk [vmem:[%s2109_s29 + $0x8] sm:$0xff] %vm932_vm8, %v1521_v6 }
 0x4ad   : > { %v936_v7 = vpop.permute.xlu1 %935 }
 0x4ae   : > { %938 = vst.msk [vmem:[%s2112_s21] sm:$0xff] %vm932_vm8, %v936_v7 }
 0x4b1   : > { %v954_v8 = vpop.permute.xlu1 %953 }
 0x4b2   : > { %1317 = vst.msk [vmem:[%s2112_s21 + $0x8] sm:$0xff] %vm932_vm8, %v954_v8 }
 0x4b3   : > { %1693 = shalt.err (!%p1690_p11)
}
 0x4b4   : > { %s1694_s21 = scalar_lea.hbm %s2170_s25, 256  ;;  %s1698_s12 = scalar_lea.hbm %s2372_s24, 512 }
 0x4b5   : > { %p1695_p2 = scmp.ne.s32.totalorder %s2170_s25, %s1694_s21  ;;  %p1699_p12 = scmp.lt.s32.totalorder %s2170_s25, %s2372_s24 }
 0x4b6   : > { %p1700_p5 = scmp.lt.s32.totalorder %s1698_s12, %s1694_s21 }
 0x4b7   : > { %p1696_p0 = pnand %p1695_p2, %p2028_p10 }
 0x4b8   : > { %p1701_p8 = por %p1700_p5, %p1699_p12 }
 0x4b9   : > { %p1697_p6 = pneg %p1696_p0 }
 0x4bb   : > { %p1702_p9 = pnand %p1701_p8, %p1697_p6 }
 0x4bd   : > { %1705 = shalt.err (!%p1702_p9)
}
 0x4be   : > { %s1851_s16 = smov 128   ;;  %s1852_s14 = smov 8   ;;  %v939_v9 = vld [vmem:[%s547_s28] sm:$0xff]  ;;  %v1318_v12 = vld [vmem:[%s547_s28 + $0x8] sm:$0xff] }
 0x4bf   : > { %1396 = dma.vmem_to_hbm [thread:$0]  (%p2028_p10), %s2172_s22, 256, %s2170_s25, %s982_s13, %s1851_s16, %s1851_s16, %s1852_s14   ;;  %v945_v10 = vpop.permute.xlu0 %944 }
 0x4c0   : > { %v947_v11 = vmul.f32 %v945_v10, %v939_v9  ;;  %s1009_s3 = sshll.u32 %s2106_s26, 4  ;;  %s1026_s21 = sshll.u32 %s2109_s29, 4  ;;  %s2216_s3 = int_to_ptr.vmem [resolvable:$true] %s1009_s3  ;;  %s2224_s21 = int_to_ptr.vmem [resolvable:$true] %s1026_s21 }
 0x4c1   : > { %s2373_s22 = sld [smem:[#allocation39_spill]]  ;;  %s2230_s29 = scalar_lea.sflag [#allocation16], %s543_s4 }
 0x4c2   : > { %v948_v13 = vadd.f32 %v1519_v5, %v947_v11  ;;  %s2374_s6 = sld [smem:[#allocation40_spill]]  ;;  %s1706_s12 = scalar_lea.vmem %s2216_s3, 256 }
 0x4c3   : > { %v965_v14 = vpop.permute.xlu0 %964  ;;  %p1707_p13 = scmp.ne.s32.totalorder %s2216_s3, %s1706_s12  ;;  %s1853_s27 = smov [#allocation15]  }
 0x4c4   : > { %949 = vst.msk [vmem:[%s2106_s26] sm:$0xff] %vm932_vm8, %v948_v13  ;;  %v967_v15 = vmul.f32 %v1318_v12, %v965_v14  ;;  %s1710_s11 = sshll.u32 %s1853_s27, 4  ;;  %s1711_s11 = int_to_ptr.vmem [resolvable:$false] %s1710_s11 }
 0x4c5   : > { %p1708_p3 = pnand %p1707_p13, %p2028_p10  ;;  %s1712_s10 = scalar_lea.vmem %s1711_s11, 512 }
 0x4c6   : > { %v968_v16 = vadd.f32 %v1521_v6, %v967_v15  ;;  %p1713_p7 = scmp.lt.s32.totalorder %s2216_s3, %s1711_s11  ;;  %p1714_p1 = scmp.lt.s32.totalorder %s1712_s10, %s1706_s12 }
 0x4c7   : > { %s2214_s25 = scalar_lea.hbm %s2373_s22, %s2161_s20  ;;  %p1709_p4 = pneg %p1708_p3 }
 0x4c8   : > { %s2222_s28 = scalar_lea.hbm %s2374_s6, %s2161_s20  ;;  %1319 = vst.msk [vmem:[%s2106_s26 + $0x8] sm:$0xff] %vm932_vm8, %v968_v16  ;;  %p1715_p11 = por %p1714_p1, %p1713_p7 }
 0x4ca   : > { %p1716_p2 = pnand %p1715_p11, %p1709_p4 }
 0x4cc   : > { %1719 = shalt.err (!%p1716_p2)
}
 0x4cd   : > { %s1720_s4 = scalar_lea.hbm %s2214_s25, 256  ;;  %s1724_s1 = scalar_lea.hbm %s2373_s22, 512 }
 0x4ce   : > { %p1721_p0 = scmp.ne.s32.totalorder %s2214_s25, %s1720_s4  ;;  %p1725_p5 = scmp.lt.s32.totalorder %s2214_s25, %s2373_s22 }
 0x4cf   : > { %p1726_p8 = scmp.lt.s32.totalorder %s1724_s1, %s1720_s4 }
 0x4d0   : > { %p1722_p6 = pnand %p1721_p0, %p2028_p10 }
 0x4d1   : > { %p1727_p9 = por %p1726_p8, %p1725_p5 }
 0x4d2   : > { %p1723_p12 = pneg %p1722_p6 }
 0x4d4   : > { %p1728_p13 = pnand %p1727_p9, %p1723_p12 }
 0x4d6   : > { %1731 = shalt.err (!%p1728_p13)
}
 0x4d7   : > { %1394 = dma.vmem_to_hbm [thread:$0]  (%p2028_p10), %s2216_s3, 256, %s2214_s25, %s2230_s29, %s1851_s16, %s1851_s16, %s1852_s14  }
 0x4d8   : > { %s1732_s12 = scalar_lea.vmem %s2224_s21, 256  ;;  %s1854_s27 = smov [#allocation17]  }
 0x4d9   : > { %p1733_p3 = scmp.ne.s32.totalorder %s2224_s21, %s1732_s12  ;;  %s1736_s11 = sshll.u32 %s1854_s27, 4  ;;  %s1737_s11 = int_to_ptr.vmem [resolvable:$false] %s1736_s11 }
 0x4da   : > { %s1738_s10 = scalar_lea.vmem %s1737_s11, 512  ;;  %p1739_p1 = scmp.lt.s32.totalorder %s2224_s21, %s1737_s11 }
 0x4db   : > { %p1734_p4 = pnand %p1733_p3, %p2028_p10  ;;  %p1740_p11 = scmp.lt.s32.totalorder %s1738_s10, %s1732_s12 }
 0x4dd   : > { %p1735_p7 = pneg %p1734_p4  ;;  %p1741_p2 = por %p1740_p11, %p1739_p1 }
 0x4df   : > { %p1742_p0 = pnand %p1741_p2, %p1735_p7 }
 0x4e1   : > { %1745 = shalt.err (!%p1742_p0)
}
 0x4e2   : > { %s1746_s4 = scalar_lea.hbm %s2222_s28, 256  ;;  %s1750_s26 = scalar_lea.hbm %s2374_s6, 512 }
 0x4e3   : > { %p1747_p6 = scmp.ne.s32.totalorder %s2222_s28, %s1746_s4  ;;  %p1751_p8 = scmp.lt.s32.totalorder %s2222_s28, %s2374_s6 }
 0x4e4   : > { %p1752_p9 = scmp.lt.s32.totalorder %s1750_s26, %s1746_s4 }
 0x4e5   : > { %p1748_p12 = pnand %p1747_p6, %p2028_p10 }
 0x4e6   : > { %p1753_p13 = por %p1752_p9, %p1751_p8 }
 0x4e7   : > { %p1749_p5 = pneg %p1748_p12 }
 0x4e9   : > { %p1754_p3 = pnand %p1753_p13, %p1749_p5 }
 0x4eb   : > { %1757 = shalt.err (!%p1754_p3)
}
 0x4ec   : > { %1395 = dma.vmem_to_hbm [thread:$0]  (%p2028_p10), %s2224_s21, 256, %s2222_s28, %s2230_s29, %s1851_s16, %s1851_s16, %s1852_s14  }
 0x4ed   : > { %p2375_p4 = scmp.eq.s32.totalorder %s1961_s19, 1 }
 0x4ef   : > { %1799 = dma.done.wait (%p2375_p4), [#allocation7], 128   ;;  %p2376_p7 = pmov %p2375_p4 }
 0x4f1   : > { %1801 = vsyncadd (%p2376_p7), [#allocation7], 4294967168 }
 0x4f2 PF: > { %s2377_s13 = sadd.s32 4294967294, %s1832_s18   ;;  %s2378_s15 = sld [smem:[#allocation29_spill]] }
 0x4f3   : > { %s1062_s12 = sand.u32 1, %s2377_s13   ;;  %p2380_p11 = scmp.ge.s32.totalorder %s1832_s18, 2 }
 0x4f4   : > { %s1063_s23 = scalar_lea.sflag [#allocation16], %s1062_s12 }
 0x4f8   : > { %p2379_p1 = scmp.ne.s32.totalorder %s2378_s15, 0 }
 0x4fa   : > { %p1420_p2 = pnand %p2380_p11, %p2379_p1 }
 0x4fc   : > { %p1421_p0 = pneg %p1420_p2 }
 0x4fe   : > { %1803 = dma.done.wait (%p1421_p0), %s1063_s23, 512  }
 0x4ff   : > { %1805 = vsyncadd (%p1421_p0), %s1063_s23, 4294966784  ;;  %s2381_s27 = sld [smem:[#allocation27_spill]] }
 0x505   : > { %s1080_s16 = sand.u32 1, %s2381_s27  }
 0x506   : > { %s1081_s14 = scalar_lea.sflag [#allocation19], %s1080_s16 }
 0x507   : > { %1807 = dma.done.wait (%p1421_p0), %s1081_s14, 256  }
 0x508   : > { %1809 = vsyncadd (%p1421_p0), %s1081_s14, 4294967040  ;;  %s39_s18 = sadd.s32 1, %s1832_s18   ;;  %s2382_s19 = sld [smem:[#allocation28_spill]] }
 0x509   : > { %p36_p10 = scmp.ge.s32.totalorder %s39_s18, 4   ;;  %s2383_s15 = sld [smem:[#allocation32_spill]] }
 0x50a   : > { %s2384_s21 = sld [smem:[#allocation31_spill]]  ;;  %s2385_s29 = smov %s1816_s30 }
 0x50b   : > { %s2387_s16 = smov %s1828_s17 }
 0x50c   :  { %38 = sbr.rel (!%p36_p10) target bundleno = 22 (0x16), region = 188 }
 0x50e   : > { %s2386_s30 = smov %s2382_s19 }
 0x510   : > { %s2388_s17 = smov %s2384_s21 }
 0x511   :  { %1086 = vsyncpa [#allocation6], 1 }
 0x512   :  { %1088 = vsyncpa [#allocation6 + $0x1], 1 }
 0x513   :  { %1089 = vsyncpa [#allocation9], 1 }
 0x514   :  { %1091 = vsyncpa [#allocation9 + $0x1], 1 }
 0x515   :  { %1092 = vsyncpa [#allocation12], 1 }
 0x516   :  { %1093 = vsyncpa [#allocation7], 1 }
 0x517   :  { %1095 = vsyncpa [#allocation7 + $0x1], 1 }
 0x518   :  { %1096 = vsyncpa [#allocation16], 1 }
 0x519   :  { %1098 = vsyncpa [#allocation16 + $0x1], 1 }
 0x51a   :  { %1099 = vsyncpa [#allocation19], 1 }
 0x51b   :  { %1101 = vsyncpa [#allocation19 + $0x1], 1 }

</bundles_post_ra>
